<compile_context>
chip_gen: v7x
topology: tpu7x:2x2x1
jax: 0.10.0
libtpu: 0.0.40
codegen_flags: <defaults>
</compile_context>

<pallas_src>
import jax
import jax.numpy as jnp
from jax.experimental import pallas as pl
from jax.experimental.pallas import tpu as pltpu


_LANES = 128
# Grid-less (whole array resident in VMEM) path is used up to this many bytes.
_GRIDLESS_MAX_BYTES = 2 * 1024 * 1024  # 2 MiB: trivially fits every chip's scoped VMEM
# Row tile for the gridded fallback: 1024 rows x 128 lanes x 4 B = 512 KiB / tile.
# in + out, double-buffered => 4 live tiles = 2 MiB: safe even on v7x (64 MiB VMEM).
_TILE_ROWS = 1024


def _sigmoid_kernel(x_ref, o_ref):
    # sigmoid(x) = 0.5 * tanh(0.5 * x) + 0.5
    # Single transcendental (EUP slot) + two VPU ops, no divide.
    x = x_ref[...]
    o_ref[...] = (jnp.tanh(x * 0.5) * 0.5 + 0.5).astype(o_ref.dtype)


def sigmoid_pallas(x):
    """Elementwise sigmoid; returns an array with the same shape/dtype as x."""
    orig_shape = x.shape
    orig_dtype = x.dtype
    total = x.size

    # --- lane-dense layout: pad flat length up to a multiple of 128 lanes -----
    flat = jnp.reshape(x, (total,))
    padded = pl.cdiv(total, _LANES) * _LANES
    if padded != total:
        flat = jnp.pad(flat, (0, padded - total))
    rows = padded // _LANES
    x2d = jnp.reshape(flat, (rows, _LANES))

    nbytes = padded * x2d.dtype.itemsize

    if nbytes <= _GRIDLESS_MAX_BYTES:
        # Tiny / moderate input: single whole-array VMEM block, no grid, no
        # pipelining machinery; alias output onto input.
        out2d = pl.pallas_call(
            _sigmoid_kernel,
            out_shape=jax.ShapeDtypeStruct(x2d.shape, x2d.dtype),
            in_specs=[pl.BlockSpec(memory_space=pltpu.MemorySpace.VMEM)],
            out_specs=pl.BlockSpec(memory_space=pltpu.MemorySpace.VMEM),
            input_output_aliases={0: 0},
        )(x2d)
        out_rows = rows
    else:
        # Large-input fallback: 1-D grid over full row tiles (pad rows so every
        # block is complete -> unmasked stores), parallel axis for megacore /
        # v7x dual-TC sharding, explicit VMEM budget.
        tile_rows = _TILE_ROWS
        padded_rows = pl.cdiv(rows, tile_rows) * tile_rows
        if padded_rows != rows:
            x2d = jnp.pad(x2d, ((0, padded_rows - rows), (0, 0)))
        out2d = pl.pallas_call(
            _sigmoid_kernel,
            out_shape=jax.ShapeDtypeStruct(x2d.shape, x2d.dtype),
            grid=(padded_rows // tile_rows,),
            in_specs=[pl.BlockSpec((tile_rows, _LANES), lambda i: (i, 0))],
            out_specs=pl.BlockSpec((tile_rows, _LANES), lambda i: (i, 0)),
            input_output_aliases={0: 0},
            compiler_params=pltpu.CompilerParams(
                dimension_semantics=("parallel",),
                vmem_limit_bytes=32 * 1024 * 1024,
            ),
        )(x2d)
        out_rows = padded_rows

    out_flat = jnp.reshape(out2d, (out_rows * _LANES,))[:total]
    return jnp.reshape(out_flat, orig_shape).astype(orig_dtype)


if __name__ == "__main__":
    key = jax.random.PRNGKey(0)
    # Same shape as the PyTorch module's input: [1, 128, 1, 1]
    x = jax.random.normal(key, (1, 128, 1, 1), dtype=jnp.float32)

    y = sigmoid_pallas(x)
    jax.block_until_ready(y)

    # Sanity check against reference sigmoid.
    y_ref = jax.nn.sigmoid(x)
    assert y.shape == x.shape and y.dtype == x.dtype
    assert jnp.allclose(y, y_ref, atol=1e-6, rtol=1e-5)

    print("KERNEL_OK")
</pallas_src>

<mosaic_0001>
module attributes {stable_mosaic.version = 11 : i64} {
  func.func @_sigmoid_kernel(%arg0: memref<1x128xf32, #tpu.memory_space<vmem>>, %arg1: memref<1x128xf32, #tpu.memory_space<vmem>>) attributes {dimension_semantics = [], scalar_prefetch = 0 : i64, scratch_operands = 0 : i64, tpu.core_type = #tpu.core_type<tc>} {
    %c0 = arith.constant 0 : index
    %c0_0 = arith.constant 0 : index
    %0 = vector.load %arg0[%c0, %c0_0] : memref<1x128xf32, #tpu.memory_space<vmem>>, vector<1x128xf32>
    %cst = arith.constant 5.000000e-01 : f32
    %1 = vector.broadcast %cst : f32 to vector<1x128xf32>
    %2 = arith.mulf %0, %1 : vector<1x128xf32>
    %3 = math.tanh %2 : vector<1x128xf32>
    %cst_1 = arith.constant 5.000000e-01 : f32
    %4 = vector.broadcast %cst_1 : f32 to vector<1x128xf32>
    %5 = arith.mulf %3, %4 : vector<1x128xf32>
    %cst_2 = arith.constant 5.000000e-01 : f32
    %6 = vector.broadcast %cst_2 : f32 to vector<1x128xf32>
    %7 = arith.addf %5, %6 : vector<1x128xf32>
    %c0_3 = arith.constant 0 : index
    %c0_4 = arith.constant 0 : index
    %8 = vector.load %arg1[%c0_3, %c0_4] : memref<1x128xf32, #tpu.memory_space<vmem>>, vector<1x128xf32>
    tpu.vector_store %arg1[%c0_3, %c0_4], %7 {strides = array<i32>} : memref<1x128xf32, #tpu.memory_space<vmem>>, vector<1x128xf32>,
    return
  }
}

</mosaic_0001>

<bundles_post_ra>
// kernel: tpu_custom_call.1
= control target key start
LH: loop header
LB: loop body
LE: loop exit
PB: predicated region body
PF: predicated region fallthrough
CT: control target
= control target key end

     0   :  { %6 = vsyncpa [#allocation3], 0  ;;  %s130_s0 = inlined_call_operand.hbm [shape: f32[1,128], index: 0, kind: input, shape index: {}, may-alias: {0,1}]   ;;  %s131_s1 = inlined_call_operand.hbm [shape: f32[1,128], index: 1, kind: output, shape index: {}, may-alias: {0,1}]  }
   0x1   :  { %7 = vsyncpa [#allocation4], 0  ;;  %s94_s6 = smov [#allocation2]   ;;  %s46_s10 = scalar_lea.hbm %s130_s0, 16 }
   0x2   :  { %s14_s7 = sshll.u32 %s94_s6, 4  ;;  %p47_p0 = scmp.ne.s32.totalorder %s130_s0, %s46_s10  ;;  %s15_s7 = int_to_ptr.vmem [resolvable:$true] %s14_s7 }
   0x3   :  { %p50_p1 = scmp.lt.u32.totalorder %s46_s10, %s130_s0 }
   0x5   :  { %p52_p2 = pnand %p50_p1, %p47_p0 }
   0x7   :  { %55 = shalt.err (!%p52_p2)
}
   0x8   :  { %s56_s15 = scalar_lea.vmem %s15_s7, 16  ;;  %s60_s16 = scalar_lea.vmem %s15_s7, 32 }
   0x9   :  { %p57_p3 = scmp.ne.s32.totalorder %s15_s7, %s56_s15  ;;  %p61_p4 = scmp.lt.s32.totalorder %s15_s7, %s15_s7 }
   0xa   :  { %p62_p5 = scmp.lt.s32.totalorder %s60_s16, %s56_s15 }
   0xc   :  { %p63_p6 = por %p62_p5, %p61_p4 }
   0xe   :  { %p64_p7 = pnand %p63_p6, %p57_p3 }
  0x10   :  { %67 = shalt.err (!%p64_p7)
}
  0x11   :  { %17 = dma.hbm_to_vmem [thread:$0]  %s130_s0, 16, %s15_s7, [#allocation3]  }
  0x12   :  { %90 = dma.done.wait [#allocation3], 16  }
  0x13   :  { %91 = vsyncadd [#allocation3], 4294967280  ;;  %v21_v0 = vld [vmem:[#allocation2] sm:$0x1]  ;;  %s95_s19 = smov [#allocation5]  }
  0x14   :  { %v22_v1 = vmul.f32 0.5, %v21_v0  ;;  %s33_s20 = sshll.u32 %s95_s19, 4  ;;  %s34_s20 = int_to_ptr.vmem [resolvable:$true] %s33_s20 }
  0x15   :  { %s68_s21 = scalar_lea.vmem %s34_s20, 16  ;;  %s72_s22 = scalar_lea.vmem %s34_s20, 32 }
  0x16   :  { %44 = vtanh.f32 %v22_v1  ;;  %p69_p8 = scmp.ne.s32.totalorder %s34_s20, %s68_s21  ;;  %p73_p9 = scmp.lt.s32.totalorder %s34_s20, %s34_s20 }
  0x17   :  { %p74_p10 = scmp.lt.s32.totalorder %s72_s22, %s68_s21 }
  0x19   :  { %p75_p11 = por %p74_p10, %p73_p9 }
  0x1b   :  { %p76_p12 = pnand %p75_p11, %p69_p8 }
  0x20   :  { %v45_v2 = vpop.eup %44 }
  0x21   :  { %v24_v3 = vmul.f32 0.5, %v45_v2 }
  0x23   :  { %v25_v4 = vadd.f32 0.5, %v24_v3 }
  0x25   :  { %26 = vst [vmem:[#allocation5] sm:$0x1] %v25_v4 }
  0x26   :  { %79 = shalt.err (!%p76_p12)
}
  0x27   :  { %s80_s24 = scalar_lea.hbm %s131_s1, 16 }
  0x28   :  { %p81_p13 = scmp.ne.s32.totalorder %s131_s1, %s80_s24  ;;  %p84_p0 = scmp.lt.u32.totalorder %s80_s24, %s131_s1 }
  0x2a   :  { %p86_p1 = pnand %p84_p0, %p81_p13 }
  0x2c   :  { %89 = shalt.err (!%p86_p1)
}
  0x2d   :  { %36 = dma.vmem_to_hbm [thread:$0]  %s34_s20, 16, %s131_s1, [#allocation4]  }
  0x2e   :  { %92 = dma.done.wait [#allocation4], 16  }
  0x2f   :  { %93 = vsyncadd [#allocation4], 4294967280 }
  0x30   :  { %40 = vsyncpa [#allocation3], 1 }
  0x31   :  { %41 = vsyncpa [#allocation4], 1 }

</bundles_post_ra>
